<compile_context>
chip_gen: v7x
topology: tpu7x:2x2x1
jax: 0.10.0
libtpu: 0.0.40
codegen_flags: <defaults>
</compile_context>

<pallas_src>
import functools
from math import sqrt

import jax
import jax.numpy as jnp
from jax.experimental import pallas as pl
from jax.experimental.pallas import tpu as pltpu


def _cdiv(a: int, b: int) -> int:
    return -(-a // b)


def _round_up(x: int, mult: int) -> int:
    return _cdiv(x, mult) * mult


def _scorer_kernel_2d(q_ref, k_ref, o_ref, *, scale: float):
    # q_ref: (tm, M), k_ref: (ts, N) with M == N, o_ref: (tm, ts)
    s = jax.lax.dot_general(            # contract both last dims -> no K transpose (XLU)
        q_ref[...],
        k_ref[...],
        dimension_numbers=(((1,), (1,)), ((), ())),
        preferred_element_type=jnp.float32,
    )                                   # (tm, ts) f32 accumulation on the MXU
    if scale != 1.0:
        s = s * scale                   # scale f32 scores (VALU slack; precision-safe)
    o_ref[...] = s.astype(o_ref.dtype)


def _scorer_kernel_batched(q_ref, k_ref, o_ref, *, scale: float):
    # q_ref: (bt, tm, M), k_ref: (bt, ts, N), o_ref: (bt, tm, ts)
    s = jax.lax.dot_general(
        q_ref[...],
        k_ref[...],
        dimension_numbers=(((2,), (2,)), ((0,), (0,))),
        preferred_element_type=jnp.float32,
    )
    if scale != 1.0:
        s = s * scale
    o_ref[...] = s.astype(o_ref.dtype)


def scorer(query, keys, scaled: bool = True, *, tm_cap: int = 512, ts_cap: int = 2048):
    """Scaled dot-product scores between query and keys (Pallas TPU kernel)."""
    assert query.shape[:-2] == keys.shape[:-2], "leading (batch/head) dims must match"
    assert query.shape[-1] == keys.shape[-1], "hidden dims must match for dot-product scores"

    lead = query.shape[:-2]
    t_len, m = query.shape[-2], query.shape[-1]
    s_len, n = keys.shape[-2], keys.shape[-1]
    bs = 1
    for d in lead:
        bs *= d

    q3 = query.reshape(bs, t_len, m)
    k3 = keys.reshape(bs, s_len, n)

    hidden = max(m, n)
    scale = (1.0 / sqrt(hidden)) if scaled else 1.0

    out_dtype = query.dtype
    itemsize = jnp.dtype(out_dtype).itemsize
    # Dtype-aware sublane pack width (f32: 8, bf16: 16, int8/fp8: 32).
    sublane = {4: 8, 2: 16, 1: 32}.get(itemsize, 8)

    # ---- Balanced tiling (no padding of inputs, exact output shape). ----
    def tile_t(nt):
        return t_len if nt <= 1 else _round_up(_cdiv(t_len, nt), sublane)

    def tile_s(ns):
        return s_len if ns <= 1 else _round_up(_cdiv(s_len, ns), 128)

    num_t = _cdiv(t_len, tm_cap) if t_len > tm_cap else 1
    tm = tile_t(num_t)
    num_s = _cdiv(s_len, ts_cap) if s_len > ts_cap else 1
    ts = tile_s(num_s)

    # v7x-safe double-buffered working-set budget (64 MiB VMEM per TC there).
    budget = 24 * 1024 * 1024

    def ws_bytes(bt_, tm_, ts_):
        return 2 * bt_ * (tm_ * m + ts_ * n + tm_ * ts_) * itemsize

    while ws_bytes(1, tm, ts) > budget and ts > 128:
        num_s += 1
        ts = tile_s(num_s)
    while ws_bytes(1, tm, ts) > budget and tm > sublane:
        num_t += 1
        tm = tile_t(num_t)
    num_t = _cdiv(t_len, tm)
    num_s = _cdiv(s_len, ts)

    # ---- Batch-block many-head / short-sequence shapes (amortize per-step cost). ----
    bt = 1
    if num_t == 1 and num_s == 1 and bs > 1:
        step_bytes = (tm * m + ts * n + tm * ts) * itemsize
        want = max(1, min(16, (512 * 1024) // max(step_bytes, 1)))
        bt = max(1, min(want, bs // 2))            # keep >=2 grid steps (v7x megacore)
        while bt > 1 and ws_bytes(bt, tm, ts) > budget:
            bt -= 1

    # Avoid a fully degenerate (single-step) grid when bs == 1 so both v7x TCs work.
    if bs == 1 and num_t == 1 and num_s == 1:
        if s_len >= 256:
            ts = tile_s(2)
            num_s = _cdiv(s_len, ts)
        elif t_len >= 2 * sublane:
            tm = tile_t(2)
            num_t = _cdiv(t_len, tm)

    ws = ws_bytes(bt, tm, ts)
    vmem_limit = int(min(max(2 * ws, 32 * 1024 * 1024), 48 * 1024 * 1024))

    if bt > 1:
        # Whole Q/K resident per batch element; several heads per grid step.
        grid = (_cdiv(bs, bt),)
        in_specs = [
            pl.BlockSpec((bt, t_len, m), lambda b: (b, 0, 0)),
            pl.BlockSpec((bt, s_len, n), lambda b: (b, 0, 0)),
        ]
        out_specs = pl.BlockSpec((bt, t_len, s_len), lambda b: (b, 0, 0))
        kernel = functools.partial(_scorer_kernel_batched, scale=scale)
        dim_sem = ("parallel",)
        bytes_accessed = (q3.size + k3.size + bs * t_len * s_len) * itemsize
    else:
        # T innermost -> K tile's block index constant across consecutive steps
        # (K DMA reused); Q is the smaller re-read stream (num_s re-reads).
        grid = (bs, num_s, num_t)
        in_specs = [
            pl.BlockSpec((None, tm, m), lambda b, si, ti: (b, ti, 0)),
            pl.BlockSpec((None, ts, n), lambda b, si, ti: (b, si, 0)),
        ]
        out_specs = pl.BlockSpec((None, tm, ts), lambda b, si, ti: (b, ti, si))
        kernel = functools.partial(_scorer_kernel_2d, scale=scale)
        dim_sem = ("parallel", "parallel", "parallel")
        bytes_accessed = (q3.size * num_s + k3.size + bs * t_len * s_len) * itemsize

    cost = pl.CostEstimate(
        flops=2 * bs * t_len * s_len * m,
        transcendentals=0,
        bytes_accessed=int(bytes_accessed),
    )

    out3 = pl.pallas_call(
        kernel,
        out_shape=jax.ShapeDtypeStruct((bs, t_len, s_len), out_dtype),
        grid=grid,
        in_specs=in_specs,
        out_specs=out_specs,
        compiler_params=pltpu.CompilerParams(
            dimension_semantics=dim_sem,
            vmem_limit_bytes=vmem_limit,
        ),
        cost_estimate=cost,
    )(q3, k3)

    return out3.reshape(*lead, t_len, s_len)


if __name__ == "__main__":
    key = jax.random.PRNGKey(0)
    kq, kk = jax.random.split(key)

    # 1) Small canonical shape (single-tile path, squeezed-batch 2-D kernel).
    bs, target_len, source_len, hidden = 2, 8, 8, 32
    query = jax.random.normal(kq, (bs, target_len, hidden), dtype=jnp.float32)
    keys = jax.random.normal(kk, (bs, source_len, hidden), dtype=jnp.float32)
    out = jax.block_until_ready(scorer(query, keys, scaled=True))
    ref = jnp.einsum("btm,bsm->bts", query, keys) / sqrt(hidden)
    assert out.shape == (bs, target_len, source_len)
    assert jnp.allclose(out, ref, atol=1e-5, rtol=1e-5)

    # 2) Multi-head / short-sequence shape -> batch-blocked kernel, unscaled.
    q4 = jax.random.normal(kq, (2, 3, 20, 64), dtype=jnp.float32)
    k4 = jax.random.normal(kk, (2, 3, 200, 64), dtype=jnp.float32)
    out4 = jax.block_until_ready(scorer(q4, k4, scaled=False))
    ref4 = jnp.einsum("bhtm,bhsm->bhts", q4, k4)
    assert out4.shape == (2, 3, 20, 200)
    assert jnp.allclose(out4, ref4, atol=1e-3, rtol=1e-3)

    # 3) bs == 1 with ragged S -> split S into lane-aligned tiles, masked edge
    #    stores (no wrapper pad / slice), exercises the degenerate-grid fix.
    q1 = jax.random.normal(kq, (1, 16, 32), dtype=jnp.float32)
    k1 = jax.random.normal(kk, (1, 300, 32), dtype=jnp.float32)
    out1 = jax.block_until_ready(scorer(q1, k1, scaled=True))
    ref1 = jnp.einsum("btm,bsm->bts", q1, k1) / sqrt(32)
    assert out1.shape == (1, 16, 300)
    assert jnp.allclose(out1, ref1, atol=1e-3, rtol=1e-3)

    print("KERNEL_OK")
</pallas_src>

<mosaic_0001>
module attributes {stable_mosaic.version = 11 : i64} {
  func.func @_scorer_kernel_2d(%arg0: i32, %arg1: i32, %arg2: i32, %arg3: memref<1x8x32xf32, #tpu.memory_space<vmem>>, %arg4: memref<1x8x32xf32, #tpu.memory_space<vmem>>, %arg5: memref<1x8x8xf32, #tpu.memory_space<vmem>>) attributes {dimension_semantics = [#tpu.dimension_semantics<parallel>, #tpu.dimension_semantics<parallel>, #tpu.dimension_semantics<parallel>], iteration_bounds = array<i64: 2, 1, 1>, scalar_prefetch = 0 : i64, scratch_operands = 0 : i64, tpu.core_type = #tpu.core_type<tc>, window_params = [{transform_indices = @transform_0, window_bounds = array<i64: 1, 8, 32>}, {transform_indices = @transform_1, window_bounds = array<i64: 1, 8, 32>}, {transform_indices = @transform_2, window_bounds = array<i64: 1, 8, 8>}]} {
    %c0 = arith.constant 0 : index
    %c0_0 = arith.constant 0 : index
    %c0_1 = arith.constant 0 : index
    %0 = vector.load %arg3[%c0, %c0_0, %c0_1] : memref<1x8x32xf32, #tpu.memory_space<vmem>>, vector<1x8x32xf32>
    %1 = vector.shape_cast %0 : vector<1x8x32xf32> to vector<8x32xf32>
    %c0_2 = arith.constant 0 : index
    %c0_3 = arith.constant 0 : index
    %c0_4 = arith.constant 0 : index
    %2 = vector.load %arg4[%c0_2, %c0_3, %c0_4] : memref<1x8x32xf32, #tpu.memory_space<vmem>>, vector<1x8x32xf32>
    %3 = vector.shape_cast %2 : vector<1x8x32xf32> to vector<8x32xf32>
    %cst = arith.constant dense<0.000000e+00> : vector<8x8xf32>
    %4 = tpu.matmul %1, %3, %cst {dimension_numbers = #tpu.dot_dimension_numbers<[1], [1], [0], [0], [0, 0, 1, 0], [], []>} : vector<8x32xf32>, vector<8x32xf32>, vector<8x8xf32> -> vector<8x8xf32>
    %cst_5 = arith.constant 0.176776692 : f32
    %5 = vector.broadcast %cst_5 : f32 to vector<8x8xf32>
    %6 = arith.mulf %4, %5 : vector<8x8xf32>
    %c0_6 = arith.constant 0 : index
    %c0_7 = arith.constant 0 : index
    %c0_8 = arith.constant 0 : index
    %7 = vector.load %arg5[%c0_6, %c0_7, %c0_8] : memref<1x8x8xf32, #tpu.memory_space<vmem>>, vector<1x8x8xf32>
    %8 = vector.shape_cast %7 : vector<1x8x8xf32> to vector<8x8xf32>
    %9 = vector.shape_cast %6 : vector<8x8xf32> to vector<1x8x8xf32>
    tpu.vector_store %arg5[%c0_6, %c0_7, %c0_8], %9 {strides = array<i32>} : memref<1x8x8xf32, #tpu.memory_space<vmem>>, vector<1x8x8xf32>,
    return
  }
  func.func @transform_0(%arg0: i32, %arg1: i32, %arg2: i32) -> (i32, i32, i32) {
    %c0_i32 = arith.constant 0 : i32
    %c0_i32_0 = arith.constant 0 : i32
    return %arg0, %arg2, %c0_i32 : i32, i32, i32
  }
  func.func @transform_1(%arg0: i32, %arg1: i32, %arg2: i32) -> (i32, i32, i32) {
    %c0_i32 = arith.constant 0 : i32
    %c0_i32_0 = arith.constant 0 : i32
    return %arg0, %arg1, %c0_i32 : i32, i32, i32
  }
  func.func @transform_2(%arg0: i32, %arg1: i32, %arg2: i32) -> (i32, i32, i32) {
    %c0_i32 = arith.constant 0 : i32
    return %arg0, %arg2, %arg1 : i32, i32, i32
  }
}

</mosaic_0001>

<bundles_post_ra>
// kernel: tpu_custom_call.1
= control target key start
LH: loop header
LB: loop body
LE: loop exit
PB: predicated region body
PF: predicated region fallthrough
CT: control target
= control target key end

     0   :  { %7 = vsyncpa [#allocation3], 0  ;;  %s913_s0 = inlined_call_operand.hbm [shape: f32[2,8,32], index: 0, kind: input, shape index: {}]   ;;  %s914_s1 = inlined_call_operand.hbm [shape: f32[2,8,32], index: 1, kind: input, shape index: {}]   ;;  %s915_s2 = inlined_call_operand.hbm [shape: f32[2,8,8], index: 2, kind: output, shape index: {}]  }
   0x1   :  { %9 = vsyncpa [#allocation3 + $0x1], 0 }
   0x2   :  { %10 = vsyncpa [#allocation6], 0 }
   0x3   :  { %12 = vsyncpa [#allocation6 + $0x1], 0 }
   0x4   :  { %13 = vsyncpa [#allocation4], 0 }
   0x5   :  { %15 = vsyncpa [#allocation4 + $0x1], 0  ;;  %s693_s9 = smov 0   ;;  %s695_s10 = smov 0  }
   0x6   :  { %s697_s11 = smov 0   ;;  %s699_s12 = smov 0  }
   0x7   :  { %s701_s13 = smov 0   ;;  %s703_s14 = smov 0  }
   0x8 LB: > { %s431_s15 = sadd.s32 4294967295, %s671_s14   ;;  %s432_s16 = sadd.s32 4294967294, %s671_s14   ;;  %s671_s14 = sphi %s703_s14, %s21_s14   ;;  %s667_s13 = sphi %s701_s13, %s935_s13   ;;  %s663_s12 = sphi %s699_s12, %s934_s12   ;;  %s659_s11 = sphi %s697_s11, %s933_s11   ;;  %s655_s10 = sphi %s695_s10, %s932_s10   ;;  %s651_s9 = sphi %s693_s9, %s931_s9  }
   0x9   : > { %s40_s17 = sadd.s32 1, %s667_s13  ;;  %s49_s18 = sadd.s32 1, %s659_s11 }
   0xa   : > { %p42_p0 = scmp.ge.s32.totalorder %s40_s17, 2  ;;  %p56_p1 = scmp.ne.s32.totalorder %s659_s11, %s655_s10 }
   0xb   : > { %p57_p2 = scmp.eq.s32.totalorder %s671_s14, 0  ;;  %p62_p3 = scmp.ne.s32.totalorder %s655_s10, %s651_s9 }
   0xc   : > { %s937_s17 = smov (%p42_p0, %s40_s17), 0  ;;  %p63_p5 = scmp.eq.s32.totalorder %s431_s15, 0 }
   0xd   : > { %p734_p4 = por %p57_p2, %p56_p1  ;;  %s44_s20 = ssub.s32 %s667_s13, %s937_s17 }
   0xe   : > { %p118_p6 = scmp.eq.s32.totalorder %s431_s15, 1  ;;  %p47_p7 = scmp.eq.s32.totalorder %s44_s20, 0 }
   0xf   : > { %p740_p8 = por %p63_p5, %p62_p3  ;;  %p124_p10 = scmp.eq.s32.totalorder %s432_s16, 1 }
  0x10   : > { %p744_p9 = por %p118_p6, %p56_p1  ;;  %p473_p13 = scmp.lt.s32.totalorder %s671_s14, 2 }
  0x11   : > { %s919_s21 = scalar_select %p740_p8, 1, 0 }
  0x12   : > { %s920_s22 = scalar_select %p744_p9, 1, 0 }
  0x13   : > { %s749_s23 = scalar_select %p47_p7, %s659_s11, %s49_s18  }
  0x14   : > { %p751_p11 = por %p124_p10, %p62_p3  ;;  %s758_s25 = sand.u32 1, %s659_s11  }
  0x15   : > { %s435_s26 = sshll.u32 %s758_s25, 3  ;;  %s436_s27 = sshll.u32 %s667_s13, 7 }
  0x16   : > { %s921_s24 = scalar_select %p751_p11, 1, 0 }
  0x17   : > { %s767_s30 = scalar_lea.hbm %s913_s0, %s436_s27  ;;  %s148_s3 = scalar_lea.vmem [#allocation2], %s435_s26 }
  0x18   : > { %s156_s4 = sshll.u32 %s148_s3, 4  ;;  %p775_p0 = pnand %p473_p13, %p734_p4  ;;  %s771_s4 = int_to_ptr.vmem [resolvable:$true] %s156_s4 }
  0x19   : > { %s145_s6 = scalar_lea.sflag [#allocation3], %s758_s25  ;;  %s525_s7 = scalar_lea.hbm %s767_s30, 128 }
  0x1a   : > { %p526_p3 = scmp.ne.s32.totalorder %s767_s30, %s525_s7  ;;  %p527_p5 = pneg %p775_p0 }
  0x1b   : > { %s530_s16 = scalar_lea.hbm %s913_s0, 256  ;;  %p531_p4 = scmp.lt.u32.totalorder %s767_s30, %s913_s0 }
  0x1c   : > { %p528_p6 = pnand %p527_p5, %p526_p3  ;;  %p532_p10 = scmp.lt.u32.totalorder %s530_s16, %s525_s7 }
  0x1d   : > { %p534_p12 = scmp.lt.u32.totalorder %s525_s7, %s767_s30 }
  0x1e   : > { %p529_p7 = pneg %p528_p6  ;;  %p533_p13 = por %p532_p10, %p531_p4 }
  0x20   : > { %p535_p1 = por %p534_p12, %p533_p13 }
  0x22   : > { %p536_p2 = pnand %p535_p1, %p529_p7 }
  0x24   : > { %539 = shalt.err (!%p536_p2)
}
  0x25   : > { %s540_s20 = scalar_lea.vmem %s771_s4, 128  ;;  %s673_s28 = smov [#allocation2]  }
  0x26   : > { %p541_p3 = scmp.ne.s32.totalorder %s771_s4, %s540_s20  ;;  %s545_s29 = sshll.u32 %s673_s28, 4  ;;  %s546_s29 = int_to_ptr.vmem [resolvable:$false] %s545_s29 }
  0x27   : > { %s547_s3 = scalar_lea.vmem %s546_s29, 256  ;;  %p548_p9 = scmp.lt.s32.totalorder %s771_s4, %s546_s29 }
  0x28   : > { %p543_p6 = pnand %p541_p3, %p527_p5  ;;  %p549_p4 = scmp.lt.s32.totalorder %s547_s3, %s540_s20 }
  0x2a   : > { %p544_p11 = pneg %p543_p6  ;;  %p550_p10 = por %p549_p4, %p548_p9 }
  0x2c   : > { %p551_p12 = pnand %p550_p10, %p544_p11 }
  0x2e   : > { %554 = shalt.err (!%p551_p12)
}
  0x2f   : > { %465 = dma.hbm_to_vmem [thread:$0]  (!%p775_p0), %s767_s30, 128, %s771_s4, %s145_s6  }
  0x30   : > { %p923_p1 = scmp.lt.s32.totalorder %s671_s14, 3  ;;  %p924_p2 = scmp.ge.s32.totalorder %s671_s14, 1 }
  0x31   : > { %s820_s16 = scalar_lea.hbm %s914_s1, %s436_s27  ;;  %s167_s18 = scalar_lea.vmem [#allocation5], %s435_s26 }
  0x32   : > { %p811_p7 = pnand %p924_p2, %p923_p1  ;;  %s175_s19 = sshll.u32 %s167_s18, 4  ;;  %s176_s19 = int_to_ptr.vmem [resolvable:$true] %s175_s19 }
  0x33   : > { %s164_s30 = scalar_lea.sflag [#allocation6], %s758_s25  ;;  %s555_s4 = scalar_lea.hbm %s820_s16, 128 }
  0x34   : > { %s925_s7 = scalar_select %p811_p7, 1, 0 }
  0x35   : > { %p556_p9 = scmp.ne.s32.totalorder %s820_s16, %s555_s4  ;;  %s560_s27 = scalar_lea.hbm %s914_s1, 256 }
  0x36   : > { %p561_p3 = scmp.lt.u32.totalorder %s820_s16, %s914_s1  ;;  %p562_p6 = scmp.lt.u32.totalorder %s560_s27, %s555_s4 }
  0x37   : > { %p558_p11 = pnand %p556_p9, %p527_p5  ;;  %p564_p10 = scmp.lt.u32.totalorder %s555_s4, %s820_s16 }
  0x38   : > { %p563_p4 = por %p562_p6, %p561_p3 }
  0x39   : > { %p559_p13 = pneg %p558_p11 }
  0x3a   : > { %p565_p12 = por %p564_p10, %p563_p4 }
  0x3c   : > { %p566_p1 = pnand %p565_p12, %p559_p13 }
  0x3e   : > { %569 = shalt.err (!%p566_p1)
}
  0x3f   : > { %s570_s25 = scalar_lea.vmem %s176_s19, 128  ;;  %s674_s26 = smov [#allocation5]  }
  0x40   : > { %p571_p2 = scmp.ne.s32.totalorder %s176_s19, %s570_s25  ;;  %s575_s3 = sshll.u32 %s674_s26, 4  ;;  %s576_s3 = int_to_ptr.vmem [resolvable:$false] %s575_s3 }
  0x41   : > { %s577_s8 = scalar_lea.vmem %s576_s3, 256  ;;  %p578_p8 = scmp.lt.s32.totalorder %s176_s19, %s576_s3 }
  0x42   : > { %p573_p9 = pnand %p571_p2, %p527_p5  ;;  %p579_p7 = scmp.lt.s32.totalorder %s577_s8, %s570_s25 }
  0x44   : > { %p574_p11 = pneg %p573_p9  ;;  %p580_p3 = por %p579_p7, %p578_p8 }
  0x46   : > { %p581_p6 = pnand %p580_p3, %p574_p11 }
  0x48   : > { %584 = shalt.err (!%p581_p6)
}
  0x49   : > { %468 = dma.hbm_to_vmem [thread:$0]  (!%p775_p0), %s820_s16, 128, %s176_s19, %s164_s30  }
  0x4a   : > { %p926_p13 = scmp.ne.s32.totalorder %s925_s7, 0 }
  0x4b   : > { %s847_s15 = sand.u32 (!%p926_p13), 1, %s655_s10   ;;  %p927_p5 = scmp.ne.s32.totalorder (!%p926_p13), %s919_s21, 0 }
  0x4c   : > { %184 = sbr.rel (%p926_p13) target bundleno = 319 (0x13f), region = 28  ;;  %s440_s18 = sshll.u32 (!%p926_p13), %s847_s15, 3 }
  0x4d   : > { %s187_s4 = scalar_lea.sflag (!%p926_p13), [#allocation3], %s847_s15  ;;  %s190_s6 = scalar_lea.vmem (!%p926_p13), [#allocation2], %s440_s18 }
  0x53   : > { %638 = dma.done.wait (%p927_p5), %s187_s4, 128  }
  0x54   : > { %640 = vsyncadd (%p927_p5), %s187_s4, 4294967168  ;;  %s196_s5 = scalar_lea.sflag [#allocation6], %s847_s15  ;;  %s199_s16 = scalar_lea.vmem [#allocation5], %s440_s18 }
  0x55   : > { %642 = dma.done.wait (%p927_p5), %s196_s5, 128  }
  0x56   : > { %644 = vsyncadd (%p927_p5), %s196_s5, 4294967168  ;;  %v675_v0 = vmov 0.0   ;;  %vm676_vm0 = vmmov 0   ;;  %vm227_vm1 = vcmask 261120   ;;  %v226_v1 = vld [vmem:[%s199_s16] sm:$0xff]  ;;  %v225_v2 = vld [vmem:[%s190_s6] sm:$0xff] }
  0x57   : > { %451 = vmatprep.subr.mxu0 %v675_v0  ;;  %453 = vmatprep.mubr.msk.f32.mxu0 %vm676_vm0, %v675_v0  ;;  %s446_s7 = sshll.u32 %s663_s12, 7  ;;  %s224_s19 = scalar_lea.vmem [#allocation7], %s440_s18  ;;  %vm305_vm2 = vcmask 64512  }
  0x58   : > { %452 = vmatpush3.xpose.msk.msra.mxu0 %vm227_vm1, %v226_v1  ;;  %s323_s30 = sshll.u32 %s224_s19, 4  ;;  %s864_s27 = scalar_lea.hbm %s915_s2, %s446_s7  ;;  %s866_s30 = int_to_ptr.vmem [resolvable:$true] %s323_s30 }
  0x59   : > { %s308_s28 = scalar_lea.sflag [#allocation4], %s847_s15  ;;  %s585_s29 = scalar_lea.vmem %s866_s30, 128 }
  0x5a   : > { %p586_p8 = scmp.ne.s32.totalorder %s866_s30, %s585_s29  ;;  %p928_p0 = scmp.ne.s32.totalorder %s920_s22, 0 }
  0x5b   : > { %454 = vmatmul.mubr.msk.f32.vlgmr.msra.gmra.mrb[0].mxu0 %vm227_vm1, %v225_v2  ;;  %s677_s12 = smov [#allocation7]  }
  0x5c   : > { %p587_p7 = pnand %p586_p8, %p928_p0  ;;  %s589_s25 = sshll.u32 %s677_s12, 4  ;;  %s590_s25 = int_to_ptr.vmem [resolvable:$false] %s589_s25 }
  0x5d   : > { %s591_s26 = scalar_lea.vmem %s590_s25, 256  ;;  %p592_p10 = scmp.lt.s32.totalorder %s866_s30, %s590_s25 }
  0x5e   : > { %p588_p4 = pneg %p587_p7  ;;  %p593_p12 = scmp.lt.s32.totalorder %s591_s26, %s585_s29 }
  0x60   : > { %p594_p1 = por %p593_p12, %p592_p10 }
  0x62   : > { %p595_p2 = pnand %p594_p1, %p588_p4 }
 0x12e   : > { %v300_v3 = vpop.f32.mrb[0].mxu0 }
 0x12f   : > { %v304_v4 = vmul.f32 0.17677669, %v300_v3  ;;  %v455_v5 = vpop.f32.mrb[1].mxu0 }
 0x131   : > { %306 = vst.msk [vmem:[%s224_s19] sm:$0xff] %vm305_vm2, %v304_v4 }
 0x132   : > { %598 = shalt.err (!%p595_p2)
}
 0x133   : > { %s599_s3 = scalar_lea.hbm %s864_s27, 128  ;;  %s603_s18 = scalar_lea.hbm %s915_s2, 256 }
 0x134   : > { %p600_p9 = scmp.ne.s32.totalorder %s864_s27, %s599_s3  ;;  %p604_p6 = scmp.lt.u32.totalorder %s864_s27, %s915_s2 }
 0x135   : > { %p605_p13 = scmp.lt.u32.totalorder %s603_s18, %s599_s3  ;;  %p607_p8 = scmp.lt.u32.totalorder %s599_s3, %s864_s27 }
 0x136   : > { %p601_p11 = pnand %p600_p9, %p928_p0 }
 0x137   : > { %p606_p5 = por %p605_p13, %p604_p6 }
 0x138   : > { %p602_p3 = pneg %p601_p11 }
 0x139   : > { %p608_p7 = por %p607_p8, %p606_p5 }
 0x13b   : > { %p609_p4 = pnand %p608_p7, %p602_p3 }
 0x13d   : > { %612 = shalt.err (!%p609_p4)
}
 0x13e   : > { %460 = dma.vmem_to_hbm [thread:$0]  (%p928_p0), %s866_s30, 128, %s864_s27, %s308_s28  }
 0x13f PF: > { %s335_s5 = sand.u32 1, %s651_s9   ;;  %p929_p10 = scmp.ne.s32.totalorder %s921_s24, 0 }
 0x140   : > { %p930_p12 = scmp.ge.s32.totalorder %s671_s14, 2  ;;  %s336_s16 = scalar_lea.sflag [#allocation4], %s335_s5 }
 0x142   : > { %p470_p1 = pnand %p930_p12, %p929_p10 }
 0x144   : > { %646 = dma.done.wait (!%p470_p1), %s336_s16, 128  }
 0x145   : > { %648 = vsyncadd (!%p470_p1), %s336_s16, 4294967168  ;;  %s21_s14 = sadd.s32 1, %s671_s14   ;;  %s931_s9 = smov %s655_s10 }
 0x146   : > { %p18_p2 = scmp.ge.s32.totalorder %s21_s14, 4   ;;  %s932_s10 = smov %s659_s11 }
 0x147   : > { %s933_s11 = smov %s749_s23  ;;  %s934_s12 = smov %s667_s13 }
 0x148   : > { %s935_s13 = smov %s937_s17  ;;  %20 = sbr.rel (!%p18_p2) target bundleno = 8 (0x8), region = 86 }
 0x14f   :  { %341 = vsyncpa [#allocation3], 1 }
 0x150   :  { %343 = vsyncpa [#allocation3 + $0x1], 1 }
 0x151   :  { %344 = vsyncpa [#allocation6], 1 }
 0x152   :  { %346 = vsyncpa [#allocation6 + $0x1], 1 }
 0x153   :  { %347 = vsyncpa [#allocation4], 1 }
 0x154   :  { %349 = vsyncpa [#allocation4 + $0x1], 1 }

</bundles_post_ra>
